<compile_context>
chip_gen: v7x
topology: tpu7x:2x2x1
jax: 0.10.0
libtpu: 0.0.40
codegen_flags: <defaults>
</compile_context>

<pallas_src>
import numpy as np
import jax
import jax.numpy as jnp
from jax.experimental import pallas as pl
from jax.experimental.pallas import tpu as pltpu


# ----------------------------------------------------------------------------
# Fused MLP kernel: relu(x @ W1 + b1) -> relu(.. @ W2 + b2) -> .. @ W3 + b3
# ----------------------------------------------------------------------------
def mlp_kernel(x_ref, w1_ref, b1_ref, w2_ref, b2_ref, w3_ref, b3_ref, out_ref):
    x = x_ref[...]                                                    # [tb, D_in]
    h1 = jnp.dot(x, w1_ref[...], preferred_element_type=jnp.float32) + b1_ref[...]
    h1 = jnp.maximum(h1, 0.0)                                         # ReLU
    h2 = jnp.dot(h1, w2_ref[...], preferred_element_type=jnp.float32) + b2_ref[...]
    h2 = jnp.maximum(h2, 0.0)                                         # ReLU
    out_ref[...] = (jnp.dot(h2, w3_ref[...], preferred_element_type=jnp.float32)
                    + b3_ref[...])                                    # [tb, D_out]


def _full_spec(arr):
    """Whole array resident in VMEM for every grid step (block == full shape)."""
    nd = arr.ndim
    return pl.BlockSpec(arr.shape, lambda i, _nd=nd: (0,) * _nd)


def net_generic_forward(params, x, *, block_b=None):
    """Single fused pallas_call for the whole Net_Generic forward."""
    B, D_in = x.shape
    D_out = params["w3"].shape[1]

    if block_b is None:
        block_b = B if B <= 128 else 128
    assert B % block_b == 0, "batch must be divisible by the batch block size"
    grid = (B // block_b,)

    in_specs = [
        pl.BlockSpec((block_b, D_in), lambda i: (i, 0)),   # x: tiled over batch
        _full_spec(params["w1"]), _full_spec(params["b1"]),
        _full_spec(params["w2"]), _full_spec(params["b2"]),
        _full_spec(params["w3"]), _full_spec(params["b3"]),
    ]
    out_specs = pl.BlockSpec((block_b, D_out), lambda i: (i, 0))

    return pl.pallas_call(
        mlp_kernel,
        out_shape=jax.ShapeDtypeStruct((B, D_out), jnp.float32),
        grid=grid,
        in_specs=in_specs,
        out_specs=out_specs,
        compiler_params=pltpu.CompilerParams(
            dimension_semantics=("parallel",)),   # batch blocks are independent
    )(x, params["w1"], params["b1"],
      params["w2"], params["b2"],
      params["w3"], params["b3"])


# ----------------------------------------------------------------------------
# Deterministic parameter construction (matches torch.nn.Linear default init:
# U(-1/sqrt(fan_in), 1/sqrt(fan_in)) for both weight and bias).
# ----------------------------------------------------------------------------
def linear_w(key, n_in, n_out):
    bound = 1.0 / np.sqrt(n_in)
    return jax.random.uniform(key, (n_in, n_out), jnp.float32, -bound, bound)


def linear_b(key, n_in, n_out):
    bound = 1.0 / np.sqrt(n_in)
    return jax.random.uniform(key, (1, n_out), jnp.float32, -bound, bound)


def make_params(key, input_dim, hidden, output_dim):
    ks = jax.random.split(key, 6)
    return {
        "w1": linear_w(ks[0], input_dim, hidden),
        "b1": linear_b(ks[1], input_dim, hidden),
        "w2": linear_w(ks[2], hidden, hidden),
        "b2": linear_b(ks[3], hidden, hidden),
        "w3": linear_w(ks[4], hidden, output_dim),
        "b3": linear_b(ks[5], hidden, output_dim),
    }


def reference_forward(params, x):
    h1 = jnp.maximum(x @ params["w1"] + params["b1"], 0.0)
    h2 = jnp.maximum(h1 @ params["w2"] + params["b2"], 0.0)
    return h2 @ params["w3"] + params["b3"]


if __name__ == "__main__":
    # lr is an optimizer hyper-parameter in the reference module; it does not
    # affect the forward pass, so it is unused here.
    input_dim, hidden, output_dim = 16, 32, 8
    B = 16

    key = jax.random.PRNGKey(0)
    k_params, k_x = jax.random.split(key)
    params = make_params(k_params, input_dim, hidden, output_dim)
    x = jax.random.normal(k_x, (B, input_dim), jnp.float32)

    out = net_generic_forward(params, x, block_b=8)
    jax.block_until_ready(out)

    ref = reference_forward(params, x)

    assert out.shape == (B, output_dim)
    assert bool(jnp.all(jnp.isfinite(out)))
    assert bool(jnp.allclose(out, ref, atol=1e-5, rtol=1e-5))

    print("KERNEL_OK")
</pallas_src>

<mosaic_0001>
module attributes {stable_mosaic.version = 11 : i64} {
  func.func @mlp_kernel(%arg0: i32, %arg1: memref<8x16xf32, #tpu.memory_space<vmem>>, %arg2: memref<16x32xf32, #tpu.memory_space<vmem>>, %arg3: memref<1x32xf32, #tpu.memory_space<vmem>>, %arg4: memref<32x32xf32, #tpu.memory_space<vmem>>, %arg5: memref<1x32xf32, #tpu.memory_space<vmem>>, %arg6: memref<32x8xf32, #tpu.memory_space<vmem>>, %arg7: memref<1x8xf32, #tpu.memory_space<vmem>>, %arg8: memref<8x8xf32, #tpu.memory_space<vmem>>) attributes {dimension_semantics = [#tpu.dimension_semantics<parallel>], iteration_bounds = array<i64: 2>, scalar_prefetch = 0 : i64, scratch_operands = 0 : i64, tpu.core_type = #tpu.core_type<tc>, window_params = [{transform_indices = @transform_0, window_bounds = array<i64: 8, 16>}, {pipeline_mode = #tpu.pipeline_mode<synchronous>, transform_indices = @transform_1, window_bounds = array<i64: 16, 32>}, {pipeline_mode = #tpu.pipeline_mode<synchronous>, transform_indices = @transform_2, window_bounds = array<i64: 1, 32>}, {pipeline_mode = #tpu.pipeline_mode<synchronous>, transform_indices = @transform_3, window_bounds = array<i64: 32, 32>}, {pipeline_mode = #tpu.pipeline_mode<synchronous>, transform_indices = @transform_4, window_bounds = array<i64: 1, 32>}, {pipeline_mode = #tpu.pipeline_mode<synchronous>, transform_indices = @transform_5, window_bounds = array<i64: 32, 8>}, {pipeline_mode = #tpu.pipeline_mode<synchronous>, transform_indices = @transform_6, window_bounds = array<i64: 1, 8>}, {transform_indices = @transform_7, window_bounds = array<i64: 8, 8>}]} {
    %c0 = arith.constant 0 : index
    %c0_0 = arith.constant 0 : index
    %0 = vector.load %arg1[%c0, %c0_0] : memref<8x16xf32, #tpu.memory_space<vmem>>, vector<8x16xf32>
    %c0_1 = arith.constant 0 : index
    %c0_2 = arith.constant 0 : index
    %1 = vector.load %arg2[%c0_1, %c0_2] : memref<16x32xf32, #tpu.memory_space<vmem>>, vector<16x32xf32>
    %cst = arith.constant dense<0.000000e+00> : vector<8x32xf32>
    %2 = tpu.matmul %0, %1, %cst {dimension_numbers = #tpu.dot_dimension_numbers<[1], [0], [0], [1], [0, 0, 1, 1], [], []>} : vector<8x16xf32>, vector<16x32xf32>, vector<8x32xf32> -> vector<8x32xf32>
    %c0_3 = arith.constant 0 : index
    %c0_4 = arith.constant 0 : index
    %3 = vector.load %arg3[%c0_3, %c0_4] : memref<1x32xf32, #tpu.memory_space<vmem>>, vector<1x32xf32>
    %4 = vector.broadcast %3 : vector<1x32xf32> to vector<8x32xf32>
    %5 = arith.addf %2, %4 : vector<8x32xf32>
    %cst_5 = arith.constant 0.000000e+00 : f32
    %6 = vector.broadcast %cst_5 : f32 to vector<8x32xf32>
    %7 = arith.maximumf %5, %6 : vector<8x32xf32>
    %c0_6 = arith.constant 0 : index
    %c0_7 = arith.constant 0 : index
    %8 = vector.load %arg4[%c0_6, %c0_7] : memref<32x32xf32, #tpu.memory_space<vmem>>, vector<32x32xf32>
    %cst_8 = arith.constant dense<0.000000e+00> : vector<8x32xf32>
    %9 = tpu.matmul %7, %8, %cst_8 {dimension_numbers = #tpu.dot_dimension_numbers<[1], [0], [0], [1], [0, 0, 1, 1], [], []>} : vector<8x32xf32>, vector<32x32xf32>, vector<8x32xf32> -> vector<8x32xf32>
    %c0_9 = arith.constant 0 : index
    %c0_10 = arith.constant 0 : index
    %10 = vector.load %arg5[%c0_9, %c0_10] : memref<1x32xf32, #tpu.memory_space<vmem>>, vector<1x32xf32>
    %11 = vector.broadcast %10 : vector<1x32xf32> to vector<8x32xf32>
    %12 = arith.addf %9, %11 : vector<8x32xf32>
    %cst_11 = arith.constant 0.000000e+00 : f32
    %13 = vector.broadcast %cst_11 : f32 to vector<8x32xf32>
    %14 = arith.maximumf %12, %13 : vector<8x32xf32>
    %c0_12 = arith.constant 0 : index
    %c0_13 = arith.constant 0 : index
    %15 = vector.load %arg6[%c0_12, %c0_13] : memref<32x8xf32, #tpu.memory_space<vmem>>, vector<32x8xf32>
    %cst_14 = arith.constant dense<0.000000e+00> : vector<8x8xf32>
    %16 = tpu.matmul %14, %15, %cst_14 {dimension_numbers = #tpu.dot_dimension_numbers<[1], [0], [0], [1], [0, 0, 1, 1], [], []>} : vector<8x32xf32>, vector<32x8xf32>, vector<8x8xf32> -> vector<8x8xf32>
    %c0_15 = arith.constant 0 : index
    %c0_16 = arith.constant 0 : index
    %17 = vector.load %arg7[%c0_15, %c0_16] : memref<1x8xf32, #tpu.memory_space<vmem>>, vector<1x8xf32>
    %18 = vector.broadcast %17 : vector<1x8xf32> to vector<8x8xf32>
    %19 = arith.addf %16, %18 : vector<8x8xf32>
    %c0_17 = arith.constant 0 : index
    %c0_18 = arith.constant 0 : index
    %20 = vector.load %arg8[%c0_17, %c0_18] : memref<8x8xf32, #tpu.memory_space<vmem>>, vector<8x8xf32>
    tpu.vector_store %arg8[%c0_17, %c0_18], %19 {strides = array<i32>} : memref<8x8xf32, #tpu.memory_space<vmem>>, vector<8x8xf32>,
    return
  }
  func.func @transform_0(%arg0: i32) -> (i32, i32) {
    %c0_i32 = arith.constant 0 : i32
    %c0_i32_0 = arith.constant 0 : i32
    return %arg0, %c0_i32 : i32, i32
  }
  func.func @transform_1(%arg0: i32) -> (i32, i32) {
    %c0_i32 = arith.constant 0 : i32
    %c0_i32_0 = arith.constant 0 : i32
    %c0_i32_1 = arith.constant 0 : i32
    return %c0_i32, %c0_i32_0 : i32, i32
  }
  func.func @transform_2(%arg0: i32) -> (i32, i32) {
    %c0_i32 = arith.constant 0 : i32
    %c0_i32_0 = arith.constant 0 : i32
    %c0_i32_1 = arith.constant 0 : i32
    return %c0_i32, %c0_i32_0 : i32, i32
  }
  func.func @transform_3(%arg0: i32) -> (i32, i32) {
    %c0_i32 = arith.constant 0 : i32
    %c0_i32_0 = arith.constant 0 : i32
    %c0_i32_1 = arith.constant 0 : i32
    return %c0_i32, %c0_i32_0 : i32, i32
  }
  func.func @transform_4(%arg0: i32) -> (i32, i32) {
    %c0_i32 = arith.constant 0 : i32
    %c0_i32_0 = arith.constant 0 : i32
    %c0_i32_1 = arith.constant 0 : i32
    return %c0_i32, %c0_i32_0 : i32, i32
  }
  func.func @transform_5(%arg0: i32) -> (i32, i32) {
    %c0_i32 = arith.constant 0 : i32
    %c0_i32_0 = arith.constant 0 : i32
    %c0_i32_1 = arith.constant 0 : i32
    return %c0_i32, %c0_i32_0 : i32, i32
  }
  func.func @transform_6(%arg0: i32) -> (i32, i32) {
    %c0_i32 = arith.constant 0 : i32
    %c0_i32_0 = arith.constant 0 : i32
    %c0_i32_1 = arith.constant 0 : i32
    return %c0_i32, %c0_i32_0 : i32, i32
  }
  func.func @transform_7(%arg0: i32) -> (i32, i32) {
    %c0_i32 = arith.constant 0 : i32
    %c0_i32_0 = arith.constant 0 : i32
    return %arg0, %c0_i32 : i32, i32
  }
}

</mosaic_0001>

<bundles_post_ra>
// kernel: tpu_custom_call.1
= control target key start
LH: loop header
LB: loop body
LE: loop exit
PB: predicated region body
PF: predicated region fallthrough
CT: control target
= control target key end

     0   :  { %12 = vsyncpa [#allocation3], 0  ;;  %s795_s24 = smov 0   ;;  %s894_s0 = inlined_call_operand.vmem [shape: f32[16,16], index: 0, kind: input, shape index: {}]   ;;  %s895_s1 = inlined_call_operand.hbm [shape: f32[16,32], index: 1, kind: input, shape index: {}]   ;;  %s896_s2 = inlined_call_operand.vmem [shape: f32[1,32], index: 2, kind: input, shape index: {}]   ;;  %s897_s3 = inlined_call_operand.vmem [shape: f32[32,32], index: 3, kind: input, shape index: {}]   ;;  %s898_s4 = inlined_call_operand.vmem [shape: f32[1,32], index: 4, kind: input, shape index: {}]   ;;  %s899_s5 = inlined_call_operand.vmem [shape: f32[32,8], index: 5, kind: input, shape index: {}]   ;;  %s900_s6 = inlined_call_operand.vmem [shape: f32[1,8], index: 6, kind: input, shape index: {}]   ;;  %s901_s7 = inlined_call_operand.vmem [shape: f32[16,8], index: 7, kind: output, shape index: {}]  }
   0x1 LB: > { %s801_s25 = sadd.s32 4294967295, %s747_s24   ;;  %p613_p0 = scmp.ge.s32.totalorder %s747_s24, 1  ;;  %s747_s24 = sphi %s795_s24, %s18_s24  }
   0x2   : > { %p201_p1 = scmp.lt.s32.totalorder %s747_s24, 3  ;;  %s749_s26 = smov [#allocation2]  }
   0x3   : > { %s213_s27 = sshll.u32 %s749_s26, 4  ;;  %p902_p3 = scmp.eq.s32.totalorder %s801_s25, 0  ;;  %s214_s27 = int_to_ptr.vmem [resolvable:$true] %s213_s27 }
   0x4   : > { %p805_p2 = pnand %p613_p0, %p201_p1  ;;  %s709_s9 = scalar_lea.hbm %s895_s1, 256 }
   0x5   : > { %p710_p6 = scmp.ne.s32.totalorder %s895_s1, %s709_s9  ;;  %p716_p10 = scmp.lt.u32.totalorder %s709_s9, %s895_s1 }
   0x6   : > { %s904_s28 = scalar_select %p805_p2, 1, 0 }
   0x7   : > { %p689_p4 = pneg %p805_p2 }
   0x9   : > { %p814_p5 = pnand %p902_p3, %p689_p4 }
   0xb   : > { %p711_p7 = pneg %p814_p5 }
   0xd   : > { %p712_p8 = pnand %p711_p7, %p710_p6 }
   0xf   : > { %p713_p9 = pneg %p712_p8 }
  0x11   : > { %p718_p11 = pnand %p716_p10, %p713_p9 }
  0x13   : > { %721 = shalt.err (!%p718_p11)
}
  0x14   : > { %s722_s14 = scalar_lea.vmem %s214_s27, 256  ;;  %p730_p1 = scmp.lt.s32.totalorder %s214_s27, %s214_s27 }
  0x15   : > { %p723_p12 = scmp.ne.s32.totalorder %s214_s27, %s722_s14  ;;  %p731_p4 = scmp.lt.s32.totalorder %s722_s14, %s722_s14 }
  0x17   : > { %p725_p13 = pnand %p723_p12, %p711_p7  ;;  %p732_p3 = por %p731_p4, %p730_p1 }
  0x19   : > { %p726_p0 = pneg %p725_p13 }
  0x1b   : > { %p733_p2 = pnand %p732_p3, %p726_p0 }
  0x1d   : > { %736 = shalt.err (!%p733_p2)
}
  0x1e   : > { %s750_s15 = smov 128   ;;  %s751_s16 = smov 8  }
  0x1f   : > { %692 = dma.hbm_to_vmem [thread:$0]  (!%p814_p5), %s895_s1, 256, %s214_s27, [#allocation3], %s750_s15, %s750_s15, %s751_s16  }
  0x20   : > { %p906_p6 = scmp.ne.s32.totalorder %s904_s28, 0 }
  0x21   : > { %p907_p8 = scmp.eq.s32.totalorder (!%p906_p6), %s801_s25, 0 }
  0x22   : > { %251 = sbr.rel (%p906_p6) target bundleno = 695 (0x2b7), region = 48 }
  0x29   : > { %742 = dma.done.wait (%p907_p8), [#allocation3], 256   ;;  %p908_p7 = pmov %p907_p8 }
  0x2a   : > { %p281_p2 = scmp.lt.s32.totalorder %s801_s25, 1  ;;  %v752_v0 = vmov 0.0|0.0   ;;  %vm753_vm0 = vmmov 0   ;;  %v754_v1 = vmov 0.0   ;;  %v290_v2 = vld [vmem:[#allocation2] sm:$0xff]  ;;  %v291_v3 = vld [vmem:[#allocation2 + $0x8] sm:$0xff] }
  0x2b   : > { %744 = vsyncadd (%p908_p7), [#allocation3], 4294967040  ;;  %670 = vmatprep.subr.bf16.mxu0 %v752_v0  ;;  %645 = vmatprep.mubr.msk.f32.mxu0 %vm753_vm0, %v754_v1  ;;  %v671_v4 = vpack.c.bf16 %v291_v3, %v290_v2  ;;  %v374_v5 = vld [vmem:[%s897_s3] sm:$0xff]  ;;  %v375_v6 = vld [vmem:[%s897_s3 + $0x8] sm:$0xff]  ;;  %vm299_vm1 = vcmask 130048   ;;  %vm385_vm2 = vcmask 261120  }
  0x2c   : > { %s910_s25 = smov (!%p281_p2, %s801_s25), 1  ;;  %673 = vmatprep.subr.bf16.mxu1 %v752_v0  ;;  %656 = vmatprep.mubr.msk.f32.mxu1 %vm753_vm0, %v754_v1  ;;  %v674_v7 = vpack.c.bf16 %v375_v6, %v374_v5  ;;  %v376_v9 = vld [vmem:[%s897_s3 + $0x10] sm:$0xff]  ;;  %v377_v10 = vld [vmem:[%s897_s3 + $0x18] sm:$0xff]  ;;  %v460_v12 = vld [vmem:[%s899_s5] sm:$0xff]  ;;  %vm544_vm3 = vcmask 64512  }
  0x2d   : > { %s618_s19 = sshll.u32 %s910_s25, 3  ;;  %672 = vmatpush3.bf16.msra.mxu0 %v671_v4  ;;  %v677_v11 = vpack.c.bf16 %v377_v10, %v376_v9  ;;  %v461_v13 = vld [vmem:[%s899_s5 + $0x8] sm:$0xff]  ;;  %v620_v15 = vld [vmem:[%s896_s2] ss:$0 sm:$0xff]  ;;  %v462_v20 = vld [vmem:[%s899_s5 + $0x10] sm:$0xff] }
  0x2e   : > { %s284_s22 = scalar_lea.vmem %s894_s0, %s618_s19  ;;  %675 = vmatpush3.bf16.msra.mxu1 %v674_v7  ;;  %679 = vmatprep.subr.bf16.mxu0 %v752_v0  ;;  %v680_v14 = vpack.c.bf16 %v461_v13, %v460_v12  ;;  %v463_v21 = vld [vmem:[%s899_s5 + $0x18] sm:$0xff]  ;;  %v622_v23 = vld [vmem:[%s898_s4] ss:$0 sm:$0xff]  ;;  %s288_s29 = scalar_lea.vmem %s901_s7, %s618_s19 }
  0x2f   : > { %v289_v8 = vld [vmem:[%s284_s22] sm:$0xff]  ;;  %676 = vmatprep.subr.bf16.mxu1 %v752_v0  ;;  %v683_v22 = vpack.c.bf16 %v463_v21, %v462_v20 }
  0x30   : > { %646 = vmatmul.mubr.msk.f32.vlgmr.msra.gmra.mrb[0].mxu0 %vm299_vm1, %v289_v8  ;;  %v624_v28 = vld [vmem:[%s900_s6] ss:$0 sm:$0xff] }
  0x31   : > { %667 = vmatprep.mubr.msk.f32.mxu0 %vm753_vm0, %v754_v1  ;;  %681 = vmatpush3.bf16.msra.mxu0 %v680_v14 }
  0x32   : > { %678 = vmatpush3.bf16.msra.mxu1 %v677_v11  ;;  %682 = vmatprep.subr.bf16.mxu0 %v752_v0 }
  0x35   : > { %684 = vmatpush3.bf16.msra.mxu0 %v683_v22 }
 0x103   : > { %v369_v16 = vpop.f32.mrb[0].mxu0 }
 0x104   : > { %v370_v17 = vadd.f32 %v620_v15, %v369_v16  ;;  %v647_v18 = vpop.f32.mrb[1].mxu0 }
 0x106   : > { %v373_v19 = vmax.f32 %v370_v17, 0.0 }
 0x108   : > { %657 = vmatmul.mubr.msk.f32.vlgmr.msra.gmra.mrb[0].mxu1 %vm385_vm2, %v373_v19 }
 0x1db   : > { %v455_v24 = vpop.f32.mrb[0].mxu1 }
 0x1dc   : > { %v456_v25 = vadd.f32 %v622_v23, %v455_v24  ;;  %v658_v26 = vpop.f32.mrb[1].mxu1 }
 0x1de   : > { %v459_v27 = vmax.f32 %v456_v25, 0.0 }
 0x1e0   : > { %668 = vmatmul.mubr.msk.f32.vlgmr.msra.gmra.mrb[2].mxu0 %vm385_vm2, %v459_v27 }
 0x2b3   : > { %v540_v29 = vpop.f32.mrb[2].mxu0 }
 0x2b4   : > { %v541_v30 = vadd.f32 %v624_v28, %v540_v29  ;;  %v669_v31 = vpop.f32.mrb[3].mxu0 }
 0x2b6   : > { %545 = vst.msk [vmem:[%s288_s29] sm:$0xff] %vm544_vm3, %v541_v30 }
 0x2b7 PF: > { %s18_s24 = sadd.s32 1, %s747_s24  }
 0x2b8   : > { %p15_p3 = scmp.ge.s32.totalorder %s18_s24, 4  }
 0x2ba   :  { %17 = sbr.rel (!%p15_p3) target bundleno = 1 (0x1), region = 83 }
 0x2c1   :  { %565 = vsyncpa [#allocation3], 1 }
 0x2c2   :  { %567 = vsyncpa [#allocation3 + $0x1], 1 }

</bundles_post_ra>
